<compile_context>
chip_gen: v7x
topology: tpu7x:2x2x1
jax: 0.10.0
libtpu: 0.0.40
codegen_flags: <defaults>
</compile_context>

<pallas_src>
import jax
import jax.numpy as jnp
from jax.experimental import pallas as pl
from jax.experimental.pallas import tpu as pltpu


def simplenet_kernel(w1_ref, b1_ref, w2_ref, b2_ref, x_ref, o_ref):
    # x_ref: (3, TB) VMEM tile -- features on sublanes, batch on lanes.
    # w1_ref: (3, 3) SMEM, b1_ref: (3,) SMEM, w2_ref: (3,) SMEM, b2_ref: (1,) SMEM.
    x0 = x_ref[0:1, :]                       # (1, TB)
    x1 = x_ref[1:2, :]
    x2 = x_ref[2:3, :]

    # Start the fc2 accumulation at its bias so no extra add is needed at the end.
    acc = jnp.full_like(x0, b2_ref[0])

    # Fully unrolled fc1 -> ReLU -> fc2: pure VPU broadcast FMAs, no MXU / XLU.
    for j in range(3):
        h_j = (w1_ref[0, j] * x0
               + w1_ref[1, j] * x1
               + w1_ref[2, j] * x2
               + b1_ref[j])
        h_j = jnp.maximum(h_j, 0.0)          # ReLU
        acc = acc + w2_ref[j] * h_j

    o_ref[...] = acc.astype(o_ref.dtype)     # (1, TB), lane-dense unmasked store


def simplenet_forward(x, w1, b1, w2, b2, *, max_block_b=8192):
    """x: (B, 3) float32.  w1: (3, 3) = fc1.weight.T, b1: (3,),
    w2: (3,) = fc2.weight.T squeezed, b2: (1,).  Returns (B, 1) float32."""
    B = x.shape[0]

    # Batch tile on the lane axis: a multiple of 128, capped at max_block_b.
    block_b = min(max_block_b, pl.cdiv(B, 128) * 128)
    Bp = pl.cdiv(B, block_b) * block_b
    grid = (Bp // block_b,)

    # Transposed input: (3, Bp).  Only pad when the batch is not block-aligned;
    # padded lanes are sliced off after the call.
    xt = x.T.astype(jnp.float32)
    if Bp != B:
        xt = jnp.pad(xt, ((0, 0), (0, Bp - B)))

    smem = pl.BlockSpec(memory_space=pltpu.SMEM)   # whole-array, SMEM-resident params

    out = pl.pallas_call(
        simplenet_kernel,
        out_shape=jax.ShapeDtypeStruct((1, Bp), jnp.float32),
        grid=grid,
        in_specs=[
            smem,                                            # w1 (3, 3)
            smem,                                            # b1 (3,)
            smem,                                            # w2 (3,)
            smem,                                            # b2 (1,)
            pl.BlockSpec((3, block_b), lambda i: (0, i)),    # x tile (3, TB)
        ],
        out_specs=pl.BlockSpec((1, block_b), lambda i: (0, i)),
        compiler_params=pltpu.CompilerParams(
            dimension_semantics=("parallel",),               # shard batch over TCs (v7x)
        ),
    )(w1, b1, w2, b2, xt)

    return out[:, :B].T                                      # (B, 1)


def _reference(x, w1, b1, w2, b2):
    return jnp.maximum(x @ w1 + b1, 0.0) @ w2.reshape(3, 1) + b2.reshape(1, 1)


if __name__ == "__main__":
    # Deterministic parameters matching nn.init.constant_(..., 0.5).
    # (Stored as weight.T; with constant init the transpose is identical.)
    w1 = jnp.full((3, 3), 0.5, dtype=jnp.float32)   # fc1.weight.T  (in=3, out=3)
    b1 = jnp.full((3,), 0.5, dtype=jnp.float32)     # fc1.bias
    w2 = jnp.full((3,), 0.5, dtype=jnp.float32)     # fc2.weight.T squeezed (in=3, out=1)
    b2 = jnp.full((1,), 0.5, dtype=jnp.float32)     # fc2.bias

    key = jax.random.PRNGKey(0)

    # Small deterministic input: batch=8, in_features=3.
    x = jax.random.normal(key, (8, 3), dtype=jnp.float32)
    out = jax.block_until_ready(simplenet_forward(x, w1, b1, w2, b2))
    ref = _reference(x, w1, b1, w2, b2)
    assert out.shape == (8, 1), out.shape
    assert jnp.allclose(out, ref, atol=1e-5, rtol=1e-5)

    # Non-lane-aligned batch to exercise the padding path.
    x2 = jax.random.normal(jax.random.PRNGKey(1), (50, 3), dtype=jnp.float32)
    out2 = jax.block_until_ready(simplenet_forward(x2, w1, b1, w2, b2))
    ref2 = _reference(x2, w1, b1, w2, b2)
    assert out2.shape == (50, 1), out2.shape
    assert jnp.allclose(out2, ref2, atol=1e-5, rtol=1e-5)

    print("KERNEL_OK")
</pallas_src>

<mosaic_0001>
module attributes {stable_mosaic.version = 11 : i64} {
  func.func @simplenet_kernel(%arg0: i32, %arg1: memref<3x3xf32, #tpu.memory_space<smem>>, %arg2: memref<3xf32, #tpu.memory_space<smem>>, %arg3: memref<3xf32, #tpu.memory_space<smem>>, %arg4: memref<1xf32, #tpu.memory_space<smem>>, %arg5: memref<3x128xf32, #tpu.memory_space<vmem>>, %arg6: memref<1x128xf32, #tpu.memory_space<vmem>>) attributes {dimension_semantics = [#tpu.dimension_semantics<parallel>], iteration_bounds = array<i64: 1>, scalar_prefetch = 0 : i64, scratch_operands = 0 : i64, tpu.core_type = #tpu.core_type<tc>, window_params = [{transform_indices = @transform_0, window_bounds = array<i64: 3, 3>}, {transform_indices = @transform_1, window_bounds = array<i64: 3>}, {transform_indices = @transform_2, window_bounds = array<i64: 3>}, {transform_indices = @transform_3, window_bounds = array<i64: 1>}, {transform_indices = @transform_4, window_bounds = array<i64: 3, 128>}, {transform_indices = @transform_5, window_bounds = array<i64: 1, 128>}]} {
    %c0 = arith.constant 0 : index
    %c0_0 = arith.constant 0 : index
    %0 = vector.load %arg5[%c0, %c0_0] : memref<3x128xf32, #tpu.memory_space<vmem>>, vector<1x128xf32>
    %c1 = arith.constant 1 : index
    %c0_1 = arith.constant 0 : index
    %1 = vector.load %arg5[%c1, %c0_1] : memref<3x128xf32, #tpu.memory_space<vmem>>, vector<1x128xf32>
    %c2 = arith.constant 2 : index
    %c0_2 = arith.constant 0 : index
    %2 = vector.load %arg5[%c2, %c0_2] : memref<3x128xf32, #tpu.memory_space<vmem>>, vector<1x128xf32>
    %c0_3 = arith.constant 0 : index
    %3 = memref.load %arg4[%c0_3] : memref<1xf32, #tpu.memory_space<smem>>
    %4 = vector.broadcast %3 : f32 to vector<1x128xf32>
    %c0_4 = arith.constant 0 : index
    %c0_5 = arith.constant 0 : index
    %5 = memref.load %arg1[%c0_4, %c0_5] : memref<3x3xf32, #tpu.memory_space<smem>>
    %6 = vector.broadcast %5 : f32 to vector<1x128xf32>
    %7 = arith.mulf %6, %0 : vector<1x128xf32>
    %c1_6 = arith.constant 1 : index
    %c0_7 = arith.constant 0 : index
    %8 = memref.load %arg1[%c1_6, %c0_7] : memref<3x3xf32, #tpu.memory_space<smem>>
    %9 = vector.broadcast %8 : f32 to vector<1x128xf32>
    %10 = arith.mulf %9, %1 : vector<1x128xf32>
    %11 = arith.addf %7, %10 : vector<1x128xf32>
    %c2_8 = arith.constant 2 : index
    %c0_9 = arith.constant 0 : index
    %12 = memref.load %arg1[%c2_8, %c0_9] : memref<3x3xf32, #tpu.memory_space<smem>>
    %13 = vector.broadcast %12 : f32 to vector<1x128xf32>
    %14 = arith.mulf %13, %2 : vector<1x128xf32>
    %15 = arith.addf %11, %14 : vector<1x128xf32>
    %c0_10 = arith.constant 0 : index
    %16 = memref.load %arg2[%c0_10] : memref<3xf32, #tpu.memory_space<smem>>
    %17 = vector.broadcast %16 : f32 to vector<1x128xf32>
    %18 = arith.addf %15, %17 : vector<1x128xf32>
    %cst = arith.constant 0.000000e+00 : f32
    %19 = vector.broadcast %cst : f32 to vector<1x128xf32>
    %20 = arith.maximumf %18, %19 : vector<1x128xf32>
    %c0_11 = arith.constant 0 : index
    %21 = memref.load %arg3[%c0_11] : memref<3xf32, #tpu.memory_space<smem>>
    %22 = vector.broadcast %21 : f32 to vector<1x128xf32>
    %23 = arith.mulf %22, %20 : vector<1x128xf32>
    %24 = arith.addf %4, %23 : vector<1x128xf32>
    %c0_12 = arith.constant 0 : index
    %c1_13 = arith.constant 1 : index
    %25 = memref.load %arg1[%c0_12, %c1_13] : memref<3x3xf32, #tpu.memory_space<smem>>
    %26 = vector.broadcast %25 : f32 to vector<1x128xf32>
    %27 = arith.mulf %26, %0 : vector<1x128xf32>
    %c1_14 = arith.constant 1 : index
    %c1_15 = arith.constant 1 : index
    %28 = memref.load %arg1[%c1_14, %c1_15] : memref<3x3xf32, #tpu.memory_space<smem>>
    %29 = vector.broadcast %28 : f32 to vector<1x128xf32>
    %30 = arith.mulf %29, %1 : vector<1x128xf32>
    %31 = arith.addf %27, %30 : vector<1x128xf32>
    %c2_16 = arith.constant 2 : index
    %c1_17 = arith.constant 1 : index
    %32 = memref.load %arg1[%c2_16, %c1_17] : memref<3x3xf32, #tpu.memory_space<smem>>
    %33 = vector.broadcast %32 : f32 to vector<1x128xf32>
    %34 = arith.mulf %33, %2 : vector<1x128xf32>
    %35 = arith.addf %31, %34 : vector<1x128xf32>
    %c1_18 = arith.constant 1 : index
    %36 = memref.load %arg2[%c1_18] : memref<3xf32, #tpu.memory_space<smem>>
    %37 = vector.broadcast %36 : f32 to vector<1x128xf32>
    %38 = arith.addf %35, %37 : vector<1x128xf32>
    %cst_19 = arith.constant 0.000000e+00 : f32
    %39 = vector.broadcast %cst_19 : f32 to vector<1x128xf32>
    %40 = arith.maximumf %38, %39 : vector<1x128xf32>
    %c1_20 = arith.constant 1 : index
    %41 = memref.load %arg3[%c1_20] : memref<3xf32, #tpu.memory_space<smem>>
    %42 = vector.broadcast %41 : f32 to vector<1x128xf32>
    %43 = arith.mulf %42, %40 : vector<1x128xf32>
    %44 = arith.addf %24, %43 : vector<1x128xf32>
    %c0_21 = arith.constant 0 : index
    %c2_22 = arith.constant 2 : index
    %45 = memref.load %arg1[%c0_21, %c2_22] : memref<3x3xf32, #tpu.memory_space<smem>>
    %46 = vector.broadcast %45 : f32 to vector<1x128xf32>
    %47 = arith.mulf %46, %0 : vector<1x128xf32>
    %c1_23 = arith.constant 1 : index
    %c2_24 = arith.constant 2 : index
    %48 = memref.load %arg1[%c1_23, %c2_24] : memref<3x3xf32, #tpu.memory_space<smem>>
    %49 = vector.broadcast %48 : f32 to vector<1x128xf32>
    %50 = arith.mulf %49, %1 : vector<1x128xf32>
    %51 = arith.addf %47, %50 : vector<1x128xf32>
    %c2_25 = arith.constant 2 : index
    %c2_26 = arith.constant 2 : index
    %52 = memref.load %arg1[%c2_25, %c2_26] : memref<3x3xf32, #tpu.memory_space<smem>>
    %53 = vector.broadcast %52 : f32 to vector<1x128xf32>
    %54 = arith.mulf %53, %2 : vector<1x128xf32>
    %55 = arith.addf %51, %54 : vector<1x128xf32>
    %c2_27 = arith.constant 2 : index
    %56 = memref.load %arg2[%c2_27] : memref<3xf32, #tpu.memory_space<smem>>
    %57 = vector.broadcast %56 : f32 to vector<1x128xf32>
    %58 = arith.addf %55, %57 : vector<1x128xf32>
    %cst_28 = arith.constant 0.000000e+00 : f32
    %59 = vector.broadcast %cst_28 : f32 to vector<1x128xf32>
    %60 = arith.maximumf %58, %59 : vector<1x128xf32>
    %c2_29 = arith.constant 2 : index
    %61 = memref.load %arg3[%c2_29] : memref<3xf32, #tpu.memory_space<smem>>
    %62 = vector.broadcast %61 : f32 to vector<1x128xf32>
    %63 = arith.mulf %62, %60 : vector<1x128xf32>
    %64 = arith.addf %44, %63 : vector<1x128xf32>
    %c0_30 = arith.constant 0 : index
    %c0_31 = arith.constant 0 : index
    %65 = vector.load %arg6[%c0_30, %c0_31] : memref<1x128xf32, #tpu.memory_space<vmem>>, vector<1x128xf32>
    tpu.vector_store %arg6[%c0_30, %c0_31], %64 {strides = array<i32>} : memref<1x128xf32, #tpu.memory_space<vmem>>, vector<1x128xf32>,
    return
  }
  func.func @transform_0(%arg0: i32) -> (i32, i32) {
    %c0_i32 = arith.constant 0 : i32
    %c0_i32_0 = arith.constant 0 : i32
    %c0_i32_1 = arith.constant 0 : i32
    return %c0_i32, %c0_i32_0 : i32, i32
  }
  func.func @transform_1(%arg0: i32) -> i32 {
    %c0_i32 = arith.constant 0 : i32
    %c0_i32_0 = arith.constant 0 : i32
    return %c0_i32 : i32
  }
  func.func @transform_2(%arg0: i32) -> i32 {
    %c0_i32 = arith.constant 0 : i32
    %c0_i32_0 = arith.constant 0 : i32
    return %c0_i32 : i32
  }
  func.func @transform_3(%arg0: i32) -> i32 {
    %c0_i32 = arith.constant 0 : i32
    %c0_i32_0 = arith.constant 0 : i32
    return %c0_i32 : i32
  }
  func.func @transform_4(%arg0: i32) -> (i32, i32) {
    %c0_i32 = arith.constant 0 : i32
    %c0_i32_0 = arith.constant 0 : i32
    return %c0_i32, %arg0 : i32, i32
  }
  func.func @transform_5(%arg0: i32) -> (i32, i32) {
    %c0_i32 = arith.constant 0 : i32
    %c0_i32_0 = arith.constant 0 : i32
    return %c0_i32, %arg0 : i32, i32
  }
}

</mosaic_0001>

<bundles_post_ra>
// kernel: tpu_custom_call.1
= control target key start
LH: loop header
LB: loop body
LE: loop exit
PB: predicated region body
PF: predicated region fallthrough
CT: control target
= control target key end

     0   :  { %11 = vsyncpa [#allocation5], 0  ;;  %s305_s0 = inlined_call_operand.hbm [shape: f32[3,3], index: 0, kind: input, shape index: {}]   ;;  %s306_s1 = inlined_call_operand.vmem [shape: f32[3], index: 1, kind: input, shape index: {}]   ;;  %s307_s2 = inlined_call_operand.vmem [shape: f32[3], index: 2, kind: input, shape index: {}]   ;;  %s308_s3 = inlined_call_operand.<no memory space> [shape: f32[1], index: 3, kind: input, shape index: {}]   ;;  %s309_s4 = inlined_call_operand.vmem [shape: f32[3,128], index: 4, kind: input, shape index: {}]   ;;  %s310_s5 = inlined_call_operand.hbm [shape: f32[1,128], index: 5, kind: output, shape index: {}]  }
   0x1   :  { %12 = vsyncpa [#allocation6], 0 }
   0x2   :  { %13 = vsyncpa [#allocation9], 0 }
   0x3   :  { %14 = vsyncpa [#allocation4], 0  ;;  %s29_s20 = sshll.u32 %s306_s1, 4  ;;  %s153_s23 = scalar_lea.hbm %s305_s0, 64  ;;  %s30_s20 = int_to_ptr.vmem [resolvable:$true] %s29_s20 }
   0x4   :  { %p154_p0 = scmp.ne.s32.totalorder %s305_s0, %s153_s23  ;;  %p157_p1 = scmp.lt.u32.totalorder %s153_s23, %s305_s0 }
   0x6   :  { %p159_p2 = pnand %p157_p1, %p154_p0 }
   0x8   :  { %162 = shalt.err (!%p159_p2)
}
   0x9   :  { %s217_s28 = smov [#allocation3]   ;;  %s163_s1 = scalar_lea.vmem %s30_s20, 16 }
   0xa   :  { %22 = dma.hbm_to_smem %s305_s0, 64, %s217_s28, [#allocation5]  }
   0xb   :  { %p164_p3 = scmp.ne.s32.totalorder %s30_s20, %s163_s1  ;;  %p168_p4 = scmp.lt.s32.totalorder %s30_s20, %s30_s20 }
   0xc   :  { %p169_p5 = scmp.lt.s32.totalorder %s163_s1, %s163_s1 }
   0xe   :  { %p170_p6 = por %p169_p5, %p168_p4 }
  0x10   :  { %p171_p7 = pnand %p170_p6, %p164_p3 }
  0x12   :  { %174 = shalt.err (!%p171_p7)
}
  0x13   :  { %s218_s6 = smov [#allocation7]   ;;  %s39_s9 = sshll.u32 %s307_s2, 4  ;;  %s40_s9 = int_to_ptr.vmem [resolvable:$true] %s39_s9 }
  0x14   :  { %32 = dma.vmem_to_smem %s30_s20, 16, %s218_s6, [#allocation6]  }
  0x15   :  { %s175_s10 = scalar_lea.vmem %s40_s9, 16  ;;  %p180_p9 = scmp.lt.s32.totalorder %s40_s9, %s40_s9 }
  0x16   :  { %p176_p8 = scmp.ne.s32.totalorder %s40_s9, %s175_s10  ;;  %p181_p10 = scmp.lt.s32.totalorder %s175_s10, %s175_s10 }
  0x18   :  { %p182_p11 = por %p181_p10, %p180_p9 }
  0x1a   :  { %p183_p12 = pnand %p182_p11, %p176_p8 }
  0x1c   :  { %186 = shalt.err (!%p183_p12)
}
  0x1d   :  { %s219_s0 = smov [#allocation8]  }
  0x1e   :  { %42 = dma.vmem_to_smem %s40_s9, 16, %s219_s0, [#allocation9]  }
  0x1f   :  { %209 = dma.done.wait [#allocation5], 64  }
  0x20   :  { %210 = vsyncadd [#allocation5], 4294967232 }
  0x21   :  { %211 = dma.done.wait [#allocation6], 16  }
  0x22   :  { %212 = vsyncadd [#allocation6], 4294967280 }
  0x23   :  { %213 = dma.done.wait [#allocation9], 16  }
  0x24   :  { %214 = vsyncadd [#allocation9], 4294967280 }
  0x25   :  { %56 = sfence }
  0x26   :  { %s62_s11 = sld [smem:[#allocation3]]  ;;  %s139_s14 = sld [smem:[#allocation3 + $0x1]]  ;;  %v57_v0 = vld [vmem:[%s309_s4] sm:$0x1]  ;;  %v58_v1 = vld [vmem:[%s309_s4 + $0x1] sm:$0x1]  ;;  %v61_v32 = vstv %s308_s3 }
  0x27   :  { %s137_s12 = sld [smem:[#allocation3 + $0x80]]  ;;  %s140_s15 = sld [smem:[#allocation3 + $0x81]]  ;;  %v59_v2 = vld [vmem:[%s309_s4 + $0x2] sm:$0x1] }
  0x28   :  { %s138_s2 = sld [smem:[#allocation3 + $0x100]]  ;;  %s141_s16 = sld [smem:[#allocation3 + $0x101]] }
  0x29   :  { %s269_s13 = sld [smem:[#allocation7]]  ;;  %s277_s21 = sld [smem:[#allocation7 + $0x1]] }
  0x2a   :  { %s144_s24 = sld [smem:[#allocation3 + $0x2]]  ;;  %s282_s26 = sld [smem:[#allocation8]] }
  0x2b   :  { %s145_s25 = sld [smem:[#allocation3 + $0x82]]  ;;  %s143_s4 = sld [smem:[#allocation8 + $0x1]] }
  0x2c   :  { %v63_v3 = vstv %s62_s11  ;;  %s146_s27 = sld [smem:[#allocation3 + $0x102]]  ;;  %v82_v9 = vstv %s139_s14  ;;  %s220_s6 = smov [#allocation10]  }
  0x2d   :  { %v66_v4 = vstv %s137_s12  ;;  %v64_v5 = vmul.f32 %v63_v3, %v57_v0  ;;  %s284_s28 = sld [smem:[#allocation7 + $0x2]]  ;;  %v83_v11 = vmul.f32 %v82_v9, %v57_v0  ;;  %v85_v12 = vstv %s140_s15  ;;  %s126_s7 = sshll.u32 %s220_s6, 4  ;;  %s127_s7 = int_to_ptr.vmem [resolvable:$true] %s126_s7 }
  0x2e   :  { %v67_v6 = vmul.f32 %v66_v4, %v58_v1  ;;  %v70_v7 = vstv %s138_s2  ;;  %v89_v13 = vstv %s141_s16  ;;  %v86_v15 = vmul.f32 %v85_v12, %v58_v1  ;;  %s148_s29 = sld [smem:[#allocation8 + $0x2]]  ;;  %s187_s8 = scalar_lea.vmem %s127_s7, 16 }
  0x2f   :  { %v71_v8 = vmul.f32 %v70_v7, %v59_v2  ;;  %v74_v14 = vstv %s269_s13  ;;  %v90_v16 = vmul.f32 %v89_v13, %v59_v2  ;;  %v93_v25 = vstv %s277_s21  ;;  %p188_p13 = scmp.ne.s32.totalorder %s127_s7, %s187_s8  ;;  %s191_s3 = scalar_lea.vmem %s127_s7, 32 }
  0x30   :  { %v68_v10 = vadd.f32 %v67_v6, %v64_v5  ;;  %v101_v18 = vstv %s144_s24  ;;  %v87_v20 = vadd.f32 %v86_v15, %v83_v11  ;;  %v78_v27 = vstv %s282_s26  ;;  %p192_p0 = scmp.lt.s32.totalorder %s127_s7, %s127_s7  ;;  %p193_p1 = scmp.lt.s32.totalorder %s191_s3, %s187_s8 }
  0x31   :  { %v104_v19 = vstv %s145_s25  ;;  %v102_v21 = vmul.f32 %v101_v18, %v57_v0  ;;  %v97_v36 = vstv %s143_s4 }
  0x32   :  { %v72_v17 = vadd.f32 %v71_v8, %v68_v10  ;;  %v105_v22 = vmul.f32 %v104_v19, %v58_v1  ;;  %v108_v23 = vstv %s146_s27  ;;  %v91_v28 = vadd.f32 %v90_v16, %v87_v20  ;;  %p194_p2 = por %p193_p1, %p192_p0 }
  0x33   :  { %v109_v26 = vmul.f32 %v108_v23, %v59_v2  ;;  %v112_v31 = vstv %s284_s28 }
  0x34   :  { %v75_v24 = vadd.f32 %v74_v14, %v72_v17  ;;  %v106_v29 = vadd.f32 %v105_v22, %v102_v21  ;;  %v94_v33 = vadd.f32 %v93_v25, %v91_v28  ;;  %v116_v40 = vstv %s148_s29  ;;  %p195_p3 = pnand %p194_p2, %p188_p13 }
  0x36   :  { %v76_v30 = vmax.f32 %v75_v24, 0.0  ;;  %v110_v34 = vadd.f32 %v109_v26, %v106_v29  ;;  %v95_v37 = vmax.f32 %v94_v33, 0.0 }
  0x38   :  { %v79_v35 = vmul.f32 %v78_v27, %v76_v30  ;;  %v113_v38 = vadd.f32 %v112_v31, %v110_v34  ;;  %v98_v41 = vmul.f32 %v97_v36, %v95_v37 }
  0x3a   :  { %v80_v39 = vadd.f32 %v79_v35, %v61_v32  ;;  %v114_v42 = vmax.f32 %v113_v38, 0.0 }
  0x3c   :  { %v99_v43 = vadd.f32 %v98_v41, %v80_v39  ;;  %v117_v44 = vmul.f32 %v116_v40, %v114_v42 }
  0x3e   :  { %v118_v45 = vadd.f32 %v117_v44, %v99_v43 }
  0x40   :  { %119 = vst [vmem:[#allocation10] sm:$0x1] %v118_v45 }
  0x41   :  { %198 = shalt.err (!%p195_p3)
}
  0x42   :  { %s199_s0 = scalar_lea.hbm %s310_s5, 16 }
  0x43   :  { %p200_p4 = scmp.ne.s32.totalorder %s310_s5, %s199_s0  ;;  %p203_p5 = scmp.lt.u32.totalorder %s199_s0, %s310_s5 }
  0x45   :  { %p205_p6 = pnand %p203_p5, %p200_p4 }
  0x47   :  { %208 = shalt.err (!%p205_p6)
}
  0x48   :  { %129 = dma.vmem_to_hbm [thread:$0]  %s127_s7, 16, %s310_s5, [#allocation4]  }
  0x49   :  { %215 = dma.done.wait [#allocation4], 16  }
  0x4a   :  { %216 = vsyncadd [#allocation4], 4294967280 }
  0x4b   :  { %133 = vsyncpa [#allocation4], 1 }
  0x4c   :  { %134 = vsyncpa [#allocation5], 1 }
  0x4d   :  { %135 = vsyncpa [#allocation6], 1 }
  0x4e   :  { %136 = vsyncpa [#allocation9], 1 }

</bundles_post_ra>
